<compile_context>
chip_gen: v5e
topology: v5e:2x2
jax: 0.10.0
libtpu: 0.0.40
codegen_flags: <defaults>
</compile_context>

<pallas_src>
import jax
import jax.numpy as jnp
from jax.experimental import pallas as pl
from jax.experimental.pallas import tpu as pltpu

HIDDEN = 128
_LANES = 128


def _fused_head_kernel(x_ref, w_ref, b_ref, o_ref):
    # x_ref: (TB, KD) input dtype  [VMEM, batch-tiled, double-buffered]
    # w_ref: (KD, K)  float32      [VMEM, same block every step -> resident]
    # b_ref: (1, 1)   float32      [SMEM scalar]
    # o_ref: (TB, K)  float32      [VMEM]
    x = x_ref[...].astype(jnp.float32)          # no-op for f32 inputs
    logits = jnp.dot(x, w_ref[...], preferred_element_type=jnp.float32)
    o_ref[...] = jax.nn.sigmoid(logits + b_ref[0, 0])


def _pick_tile(rows_total, row_bytes_in, *, target_bytes, min_steps=4):
    """Rows per grid step, sized so each step moves ~target_bytes of HBM traffic."""
    per_row = row_bytes_in + _LANES * 4          # + lane-padded f32 output row
    tb = max(1, target_bytes // per_row)
    if rows_total >= min_steps * 8:
        # keep >= min_steps grid steps: megacore split (v7x) + double-buffer overlap
        tb = min(tb, rows_total // min_steps)
    tb = min(tb, rows_total)
    if tb < rows_total:
        tb = max(8, (tb // 8) * 8)               # sublane multiple unless full extent
    return int(tb)


def classification_layer_1(x, w1, b1, w2, b2, *, target_tile_bytes=2 << 20):
    """x: (B, D); w1: (D, 128); b1: (1, 128); w2: (128, 1); b2: (1, 1) -> (B, 1) f32."""
    B, D = x.shape

    # --- algebraic fusion of the two Linears (exact because dropout p=0) ---
    w_eff = jnp.dot(w1, w2).astype(jnp.float32)                     # (D, 1)
    b_eff = (jnp.dot(b1, w2) + b2).astype(jnp.float32).reshape(1, 1)

    # --- lane packing: fold k rows of x into one 128-wide row when D | 128 ---
    k = 1
    if D < _LANES and _LANES % D == 0 and B % (_LANES // D) == 0:
        k = _LANES // D
    if k > 1:
        x_in = x.reshape(B // k, k * D)                    # contiguous -> free reshape
        w_in = jnp.kron(jnp.eye(k, dtype=jnp.float32), w_eff)  # (k*D, k) block-diagonal
    else:
        x_in, w_in = x, w_eff
    rows, kd = x_in.shape

    tb = _pick_tile(rows, kd * x_in.dtype.itemsize, target_bytes=target_tile_bytes)
    grid = (pl.cdiv(rows, tb),)

    # VMEM budget from actual tile sizes (double-buffered x + lane-padded out + weight).
    vmem_need = (2 * tb * kd * x_in.dtype.itemsize
                 + 2 * tb * _LANES * 4
                 + kd * _LANES * 4)
    vmem_limit = max(16 << 20, int(vmem_need) + (4 << 20))  # well under v7x's 64 MiB

    out = pl.pallas_call(
        _fused_head_kernel,
        out_shape=jax.ShapeDtypeStruct((rows, k), jnp.float32),
        grid=grid,
        in_specs=[
            # x: batch-tiled, double-buffered by the Pallas pipeline.
            pl.BlockSpec((tb, kd), lambda i: (i, 0)),
            # w: same block every step -> stays VMEM-resident (no re-DMA).
            pl.BlockSpec((kd, k), lambda i: (0, 0)),
            # b: scalar via SMEM (no VMEM tile / DMA for a (1,1) block).
            pl.BlockSpec(memory_space=pltpu.MemorySpace.SMEM),
        ],
        out_specs=pl.BlockSpec((tb, k), lambda i: (i, 0)),
        compiler_params=pltpu.CompilerParams(
            dimension_semantics=("parallel",),   # megacore-shardable batch axis
            vmem_limit_bytes=vmem_limit,
        ),
    )(x_in, w_in, b_eff)

    return out.reshape(B, 1)


def init_params(key, dim):
    """Deterministic init mimicking torch.nn.Linear (U(-1/sqrt(fan_in), +1/sqrt(fan_in)))."""
    k1, k2, k3, k4 = jax.random.split(key, 4)
    bound1 = 1.0 / jnp.sqrt(jnp.float32(dim))
    bound2 = 1.0 / jnp.sqrt(jnp.float32(HIDDEN))
    # Stored as (in_features, out_features) = transpose of torch's (out, in).
    w1 = jax.random.uniform(k1, (dim, HIDDEN), jnp.float32, -bound1, bound1)
    b1 = jax.random.uniform(k2, (1, HIDDEN), jnp.float32, -bound1, bound1)
    w2 = jax.random.uniform(k3, (HIDDEN, 1), jnp.float32, -bound2, bound2)
    b2 = jax.random.uniform(k4, (1, 1), jnp.float32, -bound2, bound2)
    return w1, b1, w2, b2


if __name__ == "__main__":
    key = jax.random.PRNGKey(0)
    kx, kp = jax.random.split(key)

    cases = [
        (4096, 32),   # lane-packed (k=4), multi-step grid
        (8, 32),      # lane-packed, tiny single-block grid
        (1000, 48),   # fallback path (128 % 48 != 0), partial last block
    ]
    for ci, (B, D) in enumerate(cases):
        w1, b1, w2, b2 = init_params(jax.random.fold_in(kp, ci), D)
        x = jax.random.normal(jax.random.fold_in(kx, ci), (B, D), jnp.float32)

        out = jax.block_until_ready(classification_layer_1(x, w1, b1, w2, b2))

        # Reference: the original (unfused, full-f32) two-layer computation.
        ref = jax.nn.sigmoid((x @ w1 + b1) @ w2 + b2)
        assert out.shape == (B, 1)
        err = float(jnp.max(jnp.abs(out - ref)))
        assert jnp.allclose(out, ref, atol=1e-3, rtol=1e-3), (
            f"case {ci}: max abs err = {err}")

    print("KERNEL_OK")
</pallas_src>

<mosaic_0001>
module attributes {stable_mosaic.version = 11 : i64} {
  func.func @_fused_head_kernel(%arg0: i32, %arg1: memref<256x128xf32, #tpu.memory_space<vmem>>, %arg2: memref<128x4xf32, #tpu.memory_space<vmem>>, %arg3: memref<1x1xf32, #tpu.memory_space<smem>>, %arg4: memref<256x4xf32, #tpu.memory_space<vmem>>) attributes {dimension_semantics = [#tpu.dimension_semantics<parallel>], iteration_bounds = array<i64: 4>, scalar_prefetch = 0 : i64, scratch_operands = 0 : i64, tpu.core_type = #tpu.core_type<tc>, window_params = [{transform_indices = @transform_0, window_bounds = array<i64: 256, 128>}, {pipeline_mode = #tpu.pipeline_mode<synchronous>, transform_indices = @transform_1, window_bounds = array<i64: 128, 4>}, {transform_indices = @transform_2, window_bounds = array<i64: 1, 1>}, {transform_indices = @transform_3, window_bounds = array<i64: 256, 4>}]} {
    %c0 = arith.constant 0 : index
    %c0_0 = arith.constant 0 : index
    %0 = vector.load %arg1[%c0, %c0_0] : memref<256x128xf32, #tpu.memory_space<vmem>>, vector<256x128xf32>
    %c0_1 = arith.constant 0 : index
    %c0_2 = arith.constant 0 : index
    %1 = vector.load %arg2[%c0_1, %c0_2] : memref<128x4xf32, #tpu.memory_space<vmem>>, vector<128x4xf32>
    %cst = arith.constant dense<0.000000e+00> : vector<256x4xf32>
    %2 = tpu.matmul %0, %1, %cst {dimension_numbers = #tpu.dot_dimension_numbers<[1], [0], [0], [1], [0, 0, 1, 1], [], []>} : vector<256x128xf32>, vector<128x4xf32>, vector<256x4xf32> -> vector<256x4xf32>
    %c0_3 = arith.constant 0 : index
    %c0_4 = arith.constant 0 : index
    %3 = memref.load %arg3[%c0_3, %c0_4] : memref<1x1xf32, #tpu.memory_space<smem>>
    %4 = vector.broadcast %3 : f32 to vector<256x4xf32>
    %5 = arith.addf %2, %4 : vector<256x4xf32>
    %6 = arith.negf %5 : vector<256x4xf32>
    %7 = math.exp %6 : vector<256x4xf32>
    %cst_5 = arith.constant 1.000000e+00 : f32
    %8 = vector.broadcast %cst_5 : f32 to vector<256x4xf32>
    %9 = arith.addf %8, %7 : vector<256x4xf32>
    %10 = arith.divf %8, %9 : vector<256x4xf32>
    %c0_6 = arith.constant 0 : index
    %c0_7 = arith.constant 0 : index
    %11 = vector.load %arg4[%c0_6, %c0_7] : memref<256x4xf32, #tpu.memory_space<vmem>>, vector<256x4xf32>
    tpu.vector_store %arg4[%c0_6, %c0_7], %10 {strides = array<i32>} : memref<256x4xf32, #tpu.memory_space<vmem>>, vector<256x4xf32>,
    return
  }
  func.func @transform_0(%arg0: i32) -> (i32, i32) {
    %c0_i32 = arith.constant 0 : i32
    %c0_i32_0 = arith.constant 0 : i32
    return %arg0, %c0_i32 : i32, i32
  }
  func.func @transform_1(%arg0: i32) -> (i32, i32) {
    %c0_i32 = arith.constant 0 : i32
    %c0_i32_0 = arith.constant 0 : i32
    %c0_i32_1 = arith.constant 0 : i32
    return %c0_i32, %c0_i32_0 : i32, i32
  }
  func.func @transform_2(%arg0: i32) -> (i32, i32) {
    %c0_i32 = arith.constant 0 : i32
    %c0_i32_0 = arith.constant 0 : i32
    %c0_i32_1 = arith.constant 0 : i32
    return %c0_i32, %c0_i32_0 : i32, i32
  }
  func.func @transform_3(%arg0: i32) -> (i32, i32) {
    %c0_i32 = arith.constant 0 : i32
    %c0_i32_0 = arith.constant 0 : i32
    return %arg0, %c0_i32 : i32, i32
  }
}

</mosaic_0001>

<bundles_post_ra>
// kernel: tpu_custom_call.1
= control target key start
LH: loop header
LB: loop body
LE: loop exit
PB: predicated region body
PF: predicated region fallthrough
CT: control target
= control target key end

     0   :  { %s2130_s0 = inlined_call_operand.hbm [shape: f32[1024,128], index: 0, kind: input, shape index: {}]   ;;  %s2131_s1 = inlined_call_operand.vmem [shape: f32[128,4], index: 1, kind: input, shape index: {}]   ;;  %s2132_s2 = inlined_call_operand.<no memory space> [shape: f32[1,1], index: 2, kind: input, shape index: {}]   ;;  %s2133_s3 = inlined_call_operand.vmem [shape: f32[1024,4], index: 3, kind: output, shape index: {}]  }
   0x1   :  { %8 = sst [smem:[#allocation2]] %s2132_s2 }
   0x2   :  { %9 = vsyncpa [#allocation4], 0 }
   0x3   :  { %11 = vsyncpa [#allocation4 + $0x1], 0  ;;  %s1421_s14 = smov 0   ;;  %s1423_s15 = smov 0  }
   0x4   :  { %s1425_s16 = smov 0   ;;  %s1427_s17 = smov 0  }
   0x5 LB: > { %s1067_s2 = sadd.s32 4294967295, %s1394_s17   ;;  %s1441_s18 = sadd.s32 1, %s1394_s17   ;;  %s1394_s17 = sphi %s1427_s17, %s2186_s17   ;;  %s1390_s16 = sphi %s1425_s16, %s2185_s16   ;;  %s1386_s15 = sphi %s1423_s15, %s2184_s15   ;;  %s1382_s14 = sphi %s1421_s14, %s2183_s14  }
   0x6   : > { %s21_s19 = ssub.s32 %s1394_s17, %s1441_s18  ;;  %s24_s20 = sadd.s32 1, %s1390_s16 }
   0x7   : > { %p22_p0 = scmp.eq.s32.totalorder %s21_s19, 0  ;;  %p31_p1 = scmp.ne.s32.totalorder %s1390_s16, %s1386_s15 }
   0x8   : > { %p32_p2 = scmp.eq.s32.totalorder %s1394_s17, 0  ;;  %p37_p3 = scmp.ne.s32.totalorder %s1386_s15, %s1382_s14 }
   0x9   : > { %s1451_s21 = scalar_select %p22_p0, %s1390_s16, %s24_s20  }
   0xa   : > { %p1453_p4 = por %p32_p2, %p31_p1  ;;  %p38_p5 = scmp.eq.s32.totalorder %s1067_s2, 0 }
   0xb   : > { %p1167_p6 = scmp.lt.s32.totalorder %s1394_s17, 4  ;;  %s135_s24 = sand.u32 1, %s1390_s16  }
   0xc   : > { %p1460_p7 = por %p38_p5, %p37_p3  ;;  %s1071_s25 = sshll.u32 %s135_s24, 8 }
   0xd   : > { %s1112_s26 = sshll.u32 %s1394_s17, 8  ;;  %s139_s30 = scalar_lea.vmem [#allocation3], %s1071_s25 }
   0xe   : > { %s144_s29 = scalar_lea.hbm %s2130_s0, %s1112_s26  ;;  %s147_s4 = sshll.u32 %s139_s30, 4  ;;  %s148_s4 = int_to_ptr.vmem [resolvable:$true] %s147_s4 }
   0xf   : > { %s145_s5 = sshll.u32 %s144_s29, 4  ;;  %p1471_p8 = pnand %p1167_p6, %p1453_p4  ;;  %s146_s5 = int_to_ptr.hbm [resolvable:$true] %s145_s5 }
  0x10   : > { %p1074_p9 = scmp.ge.s32.totalorder %s1394_s17, 1  ;;  %s136_s7 = scalar_lea.sflag [#allocation4], %s135_s24 }
  0x11   : > { %s1330_s8 = sshra.s32 %s146_s5, 4  ;;  %p1334_p11 = pneg %p1471_p8  ;;  %s1331_s8 = int_to_ptr.hbm [resolvable:$true] %s1330_s8 }
  0x12   : > { %s1332_s9 = scalar_lea.hbm %s1331_s8, 256  ;;  %s1337_s12 = scalar_lea.hbm %s2130_s0, 1024 }
  0x13   : > { %p1333_p10 = scmp.ne.s32.totalorder %s1331_s8, %s1332_s9  ;;  %p1338_p0 = scmp.lt.s32.totalorder %s1331_s8, %s2130_s0 }
  0x14   : > { %p1339_p1 = scmp.lt.s32.totalorder %s1337_s12, %s1332_s9 }
  0x15   : > { %p1335_p12 = pnand %p1334_p11, %p1333_p10 }
  0x16   : > { %p1340_p2 = por %p1339_p1, %p1338_p0 }
  0x17   : > { %p1336_p13 = pneg %p1335_p12 }
  0x19   : > { %p1341_p3 = pnand %p1340_p2, %p1336_p13 }
  0x1b   : > { %1344 = shalt.err (!%p1341_p3)
}
  0x1c   : > { %s1396_s19 = smov 128   ;;  %s1397_s20 = smov 8  }
  0x1d   : > { %1166 = dma.hbm_to_vmem [thread:$0]  (!%p1471_p8), %s146_s5, 4096, %s148_s4, %s136_s7, %s1396_s19, %s1396_s19, %s1397_s20  }
  0x1e   : > { %p155_p4 = scmp.lt.s32.totalorder %s1394_s17, 5 }
  0x20   : > { %p156_p5 = pnand %p1074_p9, %p155_p4 }
  0x21   : > { %s161_s22 = sand.u32 (!%p156_p5), 1, %s1386_s15  }
  0x22   : > { %159 = sbr.rel (%p156_p5) target bundleno = 353 (0x161), region = 32  ;;  %s1075_s24 = sshll.u32 (!%p156_p5), %s161_s22, 8 }
  0x23   : > { %s162_s25 = scalar_lea.sflag (!%p156_p5), [#allocation4], %s161_s22  ;;  %s1490_s26 = scalar_lea.vmem (!%p156_p5), [#allocation3], %s1075_s24 }
  0x27   : > { %1377 = dma.done.wait (%p1460_p7), %s162_s25, 4096  }
  0x28   : > { %1379 = vsyncadd (%p1460_p7), %s162_s25, 4294963200  ;;  %v243_v0 = vld [vmem:[%s2131_s1 + $0x78] sm:$0xff]  ;;  %v242_v1 = vld [vmem:[%s2131_s1 + $0x70] sm:$0xff]  ;;  %s244_s10 = sld [smem:[#allocation2]]  ;;  %vm967_vm1 = vcmask 31744  }
  0x29   : > { %246 = vmatpush.msra.mxu0 %v243_v0  ;;  %1113 = vmatpush.msra.mxu1 %v243_v0  ;;  %v241_v2 = vld [vmem:[%s2131_s1 + $0x68] sm:$0xff]  ;;  %v240_v3 = vld [vmem:[%s2131_s1 + $0x60] sm:$0xff]  ;;  %v239_v4 = vld [vmem:[%s2131_s1 + $0x58] sm:$0xff] }
  0x2a   : > { %1114 = vmatpush.msra.mxu2 %v243_v0  ;;  %1115 = vmatpush.msra.mxu3 %v243_v0  ;;  %v238_v5 = vld [vmem:[%s2131_s1 + $0x50] sm:$0xff]  ;;  %v237_v6 = vld [vmem:[%s2131_s1 + $0x48] sm:$0xff]  ;;  %v236_v7 = vld [vmem:[%s2131_s1 + $0x40] sm:$0xff] }
  0x2b   : > { %247 = vmatpush.msra.mxu0 %v242_v1  ;;  %1116 = vmatpush.msra.mxu1 %v242_v1  ;;  %v235_v8 = vld [vmem:[%s2131_s1 + $0x38] sm:$0xff]  ;;  %v234_v9 = vld [vmem:[%s2131_s1 + $0x30] sm:$0xff]  ;;  %v233_v10 = vld [vmem:[%s2131_s1 + $0x28] sm:$0xff] }
  0x2c   : > { %1117 = vmatpush.msra.mxu2 %v242_v1  ;;  %1118 = vmatpush.msra.mxu3 %v242_v1  ;;  %v232_v11 = vld [vmem:[%s2131_s1 + $0x20] sm:$0xff]  ;;  %v231_v12 = vld [vmem:[%s2131_s1 + $0x18] sm:$0xff]  ;;  %v230_v13 = vld [vmem:[%s2131_s1 + $0x10] sm:$0xff] }
  0x2d   : > { %248 = vmatpush.msra.mxu0 %v241_v2  ;;  %1119 = vmatpush.msra.mxu1 %v241_v2  ;;  %v229_v14 = vld [vmem:[%s2131_s1 + $0x8] sm:$0xff]  ;;  %v228_v15 = vld [vmem:[%s2131_s1] sm:$0xff]  ;;  %v198_v24 = vld [vmem:[%s1490_s26 + $0x10] sm:$0xff] }
  0x2e   : > { %1120 = vmatpush.msra.mxu2 %v241_v2  ;;  %1121 = vmatpush.msra.mxu3 %v241_v2  ;;  %v196_v16 = vld [vmem:[%s1490_s26] sm:$0xff]  ;;  %v197_v20 = vld [vmem:[%s1490_s26 + $0x8] sm:$0xff]  ;;  %v206_v25 = vld [vmem:[%s1490_s26 + $0x50] sm:$0xff]  ;;  %v1576_v48 = vstv %s244_s10 }
  0x2f   : > { %249 = vmatpush.msra.mxu0 %v240_v3  ;;  %1122 = vmatpush.msra.mxu1 %v240_v3  ;;  %v204_v17 = vld [vmem:[%s1490_s26 + $0x40] sm:$0xff]  ;;  %v205_v21 = vld [vmem:[%s1490_s26 + $0x48] sm:$0xff]  ;;  %v214_v26 = vld [vmem:[%s1490_s26 + $0x90] sm:$0xff] }
  0x30   : > { %1123 = vmatpush.msra.mxu2 %v240_v3  ;;  %1124 = vmatpush.msra.mxu3 %v240_v3  ;;  %v212_v18 = vld [vmem:[%s1490_s26 + $0x80] sm:$0xff]  ;;  %v213_v22 = vld [vmem:[%s1490_s26 + $0x88] sm:$0xff]  ;;  %v222_v27 = vld [vmem:[%s1490_s26 + $0xd0] sm:$0xff] }
  0x31   : > { %250 = vmatpush.msra.mxu0 %v239_v4  ;;  %1125 = vmatpush.msra.mxu1 %v239_v4  ;;  %v220_v19 = vld [vmem:[%s1490_s26 + $0xc0] sm:$0xff]  ;;  %v221_v23 = vld [vmem:[%s1490_s26 + $0xc8] sm:$0xff]  ;;  %v199_v28 = vld [vmem:[%s1490_s26 + $0x18] sm:$0xff] }
  0x32   : > { %1126 = vmatpush.msra.mxu2 %v239_v4  ;;  %1127 = vmatpush.msra.mxu3 %v239_v4  ;;  %v207_v29 = vld [vmem:[%s1490_s26 + $0x58] sm:$0xff]  ;;  %v200_v32 = vld [vmem:[%s1490_s26 + $0x20] sm:$0xff]  ;;  %v201_v36 = vld [vmem:[%s1490_s26 + $0x28] sm:$0xff] }
  0x33   : > { %251 = vmatpush.msra.mxu0 %v238_v5  ;;  %1128 = vmatpush.msra.mxu1 %v238_v5  ;;  %v215_v30 = vld [vmem:[%s1490_s26 + $0x98] sm:$0xff]  ;;  %v208_v33 = vld [vmem:[%s1490_s26 + $0x60] sm:$0xff]  ;;  %v209_v37 = vld [vmem:[%s1490_s26 + $0x68] sm:$0xff] }
  0x34   : > { %1129 = vmatpush.msra.mxu2 %v238_v5  ;;  %1130 = vmatpush.msra.mxu3 %v238_v5  ;;  %v223_v31 = vld [vmem:[%s1490_s26 + $0xd8] sm:$0xff]  ;;  %v216_v34 = vld [vmem:[%s1490_s26 + $0xa0] sm:$0xff]  ;;  %v217_v38 = vld [vmem:[%s1490_s26 + $0xa8] sm:$0xff] }
  0x35   : > { %252 = vmatpush.msra.mxu0 %v237_v6  ;;  %1131 = vmatpush.msra.mxu1 %v237_v6  ;;  %v224_v35 = vld [vmem:[%s1490_s26 + $0xe0] sm:$0xff]  ;;  %v225_v39 = vld [vmem:[%s1490_s26 + $0xe8] sm:$0xff]  ;;  %v202_v40 = vld [vmem:[%s1490_s26 + $0x30] sm:$0xff] }
  0x36   : > { %1132 = vmatpush.msra.mxu2 %v237_v6  ;;  %1133 = vmatpush.msra.mxu3 %v237_v6  ;;  %v210_v41 = vld [vmem:[%s1490_s26 + $0x70] sm:$0xff]  ;;  %v203_v44 = vld [vmem:[%s1490_s26 + $0x38] sm:$0xff] }
  0x37   : > { %253 = vmatpush.msra.mxu0 %v236_v7  ;;  %1134 = vmatpush.msra.mxu1 %v236_v7  ;;  %v218_v42 = vld [vmem:[%s1490_s26 + $0xb0] sm:$0xff]  ;;  %v211_v45 = vld [vmem:[%s1490_s26 + $0x78] sm:$0xff] }
  0x38   : > { %1135 = vmatpush.msra.mxu2 %v236_v7  ;;  %1136 = vmatpush.msra.mxu3 %v236_v7  ;;  %v226_v43 = vld [vmem:[%s1490_s26 + $0xf0] sm:$0xff]  ;;  %v219_v46 = vld [vmem:[%s1490_s26 + $0xb8] sm:$0xff] }
  0x39   : > { %254 = vmatpush.msra.mxu0 %v235_v8  ;;  %1137 = vmatpush.msra.mxu1 %v235_v8  ;;  %v227_v47 = vld [vmem:[%s1490_s26 + $0xf8] sm:$0xff]  ;;  %s1076_s26 = sshll.u32 %s1067_s2, 5 }
  0x3a   : > { %1138 = vmatpush.msra.mxu2 %v235_v8  ;;  %1139 = vmatpush.msra.mxu3 %v235_v8  ;;  %p191_p6 = scmp.lt.s32.totalorder %s1076_s26, 127 }
  0x3b   : > { %255 = vmatpush.msra.mxu0 %v234_v9  ;;  %1140 = vmatpush.msra.mxu1 %v234_v9 }
  0x3c   : > { %1141 = vmatpush.msra.mxu2 %v234_v9  ;;  %1142 = vmatpush.msra.mxu3 %v234_v9  ;;  %s2188_s26 = smov (!%p191_p6, %s1076_s26), 127 }
  0x3d   : > { %256 = vmatpush.msra.mxu0 %v233_v10  ;;  %1143 = vmatpush.msra.mxu1 %v233_v10  ;;  %s1077_s17 = sshll.u32 %s2188_s26, 3 }
  0x3e   : > { %1144 = vmatpush.msra.mxu2 %v233_v10  ;;  %1145 = vmatpush.msra.mxu3 %v233_v10  ;;  %s1636_s12 = scalar_lea.vmem %s2133_s3, %s1077_s17 }
  0x3f   : > { %257 = vmatpush.msra.mxu0 %v232_v11  ;;  %1146 = vmatpush.msra.mxu1 %v232_v11 }
  0x40   : > { %1147 = vmatpush.msra.mxu2 %v232_v11  ;;  %1148 = vmatpush.msra.mxu3 %v232_v11 }
  0x41   : > { %258 = vmatpush.msra.mxu0 %v231_v12  ;;  %1149 = vmatpush.msra.mxu1 %v231_v12 }
  0x42   : > { %1150 = vmatpush.msra.mxu2 %v231_v12  ;;  %1151 = vmatpush.msra.mxu3 %v231_v12 }
  0x43   : > { %259 = vmatpush.msra.mxu0 %v230_v13  ;;  %1152 = vmatpush.msra.mxu1 %v230_v13 }
  0x44   : > { %1153 = vmatpush.msra.mxu2 %v230_v13  ;;  %1154 = vmatpush.msra.mxu3 %v230_v13 }
  0x45   : > { %260 = vmatpush.msra.mxu0 %v229_v14  ;;  %1155 = vmatpush.msra.mxu1 %v229_v14 }
  0x46   : > { %1156 = vmatpush.msra.mxu2 %v229_v14  ;;  %1157 = vmatpush.msra.mxu3 %v229_v14 }
  0x47   : > { %261 = vmatpush.msra.mxu0 %v228_v15  ;;  %1158 = vmatpush.msra.mxu1 %v228_v15 }
  0x48   : > { %1159 = vmatpush.msra.mxu2 %v228_v15  ;;  %1160 = vmatpush.msra.mxu3 %v228_v15 }
  0x49   : > { %262 = vmatmul.f32.vlgmr.msra.gmra.mxu0 %v196_v16  ;;  %286 = vmatmul.f32.vlgmr.msra.gmra.mxu1 %v204_v17 }
  0x4a   : > { %310 = vmatmul.f32.vlgmr.msra.gmra.mxu2 %v212_v18  ;;  %334 = vmatmul.f32.vlgmr.msra.gmra.mxu3 %v220_v19 }
  0x51   : > { %265 = vmatmul.f32.gmra.mxu0 %v197_v20  ;;  %289 = vmatmul.f32.gmra.mxu1 %v205_v21 }
  0x52   : > { %313 = vmatmul.f32.gmra.mxu2 %v213_v22  ;;  %337 = vmatmul.f32.gmra.mxu3 %v221_v23 }
  0x59   : > { %268 = vmatmul.f32.gmra.mxu0 %v198_v24  ;;  %292 = vmatmul.f32.gmra.mxu1 %v206_v25 }
  0x5a   : > { %316 = vmatmul.f32.gmra.mxu2 %v214_v26  ;;  %340 = vmatmul.f32.gmra.mxu3 %v222_v27 }
  0x61   : > { %271 = vmatmul.f32.gmra.mxu0 %v199_v28  ;;  %295 = vmatmul.f32.gmra.mxu1 %v207_v29 }
  0x62   : > { %319 = vmatmul.f32.gmra.mxu2 %v215_v30  ;;  %343 = vmatmul.f32.gmra.mxu3 %v223_v31 }
  0x69   : > { %274 = vmatmul.f32.gmra.mxu0 %v200_v32  ;;  %298 = vmatmul.f32.gmra.mxu1 %v208_v33 }
  0x6a   : > { %322 = vmatmul.f32.gmra.mxu2 %v216_v34  ;;  %346 = vmatmul.f32.gmra.mxu3 %v224_v35 }
  0x71   : > { %277 = vmatmul.f32.gmra.mxu0 %v201_v36  ;;  %301 = vmatmul.f32.gmra.mxu1 %v209_v37 }
  0x72   : > { %325 = vmatmul.f32.gmra.mxu2 %v217_v38  ;;  %349 = vmatmul.f32.gmra.mxu3 %v225_v39 }
  0x79   : > { %280 = vmatmul.f32.gmra.mxu0 %v202_v40  ;;  %304 = vmatmul.f32.gmra.mxu1 %v210_v41 }
  0x7a   : > { %328 = vmatmul.f32.gmra.mxu2 %v218_v42  ;;  %352 = vmatmul.f32.gmra.mxu3 %v226_v43 }
  0x81   : > { %283 = vmatmul.f32.gmra.mxu0 %v203_v44  ;;  %307 = vmatmul.f32.gmra.mxu1 %v211_v45 }
  0x82   : > { %331 = vmatmul.f32.gmra.mxu2 %v219_v46  ;;  %355 = vmatmul.f32.gmra.mxu3 %v227_v47 }
  0xc6   : > { %v263_v49 = vpop.f32.mrf.mxu0  ;;  %v287_v50 = vpop.f32.mrf.mxu1 }
  0xc7   : > { %v264_v51 = vadd.f32 %v263_v49, %v1576_v48  ;;  %v288_v52 = vadd.f32 %v287_v50, %v1576_v48 }
  0xc9   : > { %v1078_v53 = vmul.f32 -1.442695, %v264_v51  ;;  %v1086_v54 = vmul.f32 -1.442695, %v288_v52 }
  0xcb   : > { %1202 = vpow2.f32 %v1078_v53 }
  0xcc   : > { %1204 = vpow2.f32 %v1086_v54 }
  0xcd   : > { %v311_v55 = vpop.f32.mrf.mxu2  ;;  %v335_v56 = vpop.f32.mrf.mxu3 }
  0xce   : > { %v312_v57 = vadd.f32 %v311_v55, %v1576_v48  ;;  %v336_v58 = vadd.f32 %v335_v56, %v1576_v48  ;;  %v266_v59 = vpop.f32.mrf.mxu0  ;;  %v290_v60 = vpop.f32.mrf.mxu1 }
  0xcf   : > { %v267_v61 = vadd.f32 %v266_v59, %v1576_v48  ;;  %v291_v62 = vadd.f32 %v290_v60, %v1576_v48 }
  0xd0   : > { %v1094_v63 = vmul.f32 -1.442695, %v312_v57  ;;  %v1102_v0 = vmul.f32 -1.442695, %v336_v58 }
  0xd1   : > { %v1203_v1 = vpop.eup %1202  ;;  %v1079_v4 = vmul.f32 -1.442695, %v267_v61  ;;  %v1087_v6 = vmul.f32 -1.442695, %v291_v62 }
  0xd2   : > { %v1205_v2 = vpop.eup %1204  ;;  %v1584_v3 = vadd.f32 1.0, %v1203_v1  ;;  %1206 = vpow2.f32 %v1094_v63 }
  0xd3   : > { %v1586_v5 = vadd.f32 1.0, %v1205_v2  ;;  %1208 = vpow2.f32 %v1102_v0 }
  0xd4   : > { %1210 = vrcp.f32 %v1584_v3  ;;  %v496_v10 = vand.u32 2147483647, %v1584_v3  ;;  %v498_v11 = vand.u32 2147483648, %v1584_v3  ;;  %vm492_vm0 = vweird.f32 %v1584_v3 }
  0xd5   : > { %1212 = vrcp.f32 %v1586_v5  ;;  %v314_v7 = vpop.f32.mrf.mxu2  ;;  %v338_v8 = vpop.f32.mrf.mxu3  ;;  %v616_v14 = vand.u32 2147483647, %v1586_v5  ;;  %v618_v18 = vand.u32 2147483648, %v1586_v5  ;;  %vm612_vm2 = vweird.f32 %v1586_v5 }
  0xd6   : > { %1214 = vpow2.f32 %v1079_v4  ;;  %v315_v9 = vadd.f32 %v314_v7, %v1576_v48  ;;  %v269_v12 = vpop.f32.mrf.mxu0  ;;  %v339_v16 = vadd.f32 %v338_v8, %v1576_v48  ;;  %v293_v23 = vpop.f32.mrf.mxu1  ;;  %vm1609_vm3 = vcmp.eq.f32.partialorder %v496_v10, 8.507059e+37 }
  0xd7   : > { %1216 = vpow2.f32 %v1087_v6  ;;  %v270_v22 = vadd.f32 %v269_v12, %v1576_v48  ;;  %v499_v27 = vor.u32 1.1754944e-38, %v498_v11  ;;  %vm1615_vm4 = vcmp.eq.f32.partialorder %v616_v14, 8.507059e+37 }
  0xd8   : > { %v1207_v13 = vpop.eup %1206  ;;  %v1095_v15 = vmul.f32 -1.442695, %v315_v9  ;;  %v1103_v31 = vmul.f32 -1.442695, %v339_v16  ;;  %v619_v34 = vor.u32 1.1754944e-38, %v618_v18  ;;  %v294_v35 = vadd.f32 %v293_v23, %v1576_v48 }
  0xd9   : > { %v1209_v17 = vpop.eup %1208  ;;  %v1598_v19 = vadd.f32 1.0, %v1207_v13  ;;  %v1080_v38 = vmul.f32 -1.442695, %v270_v22 }
  0xda   : > { %v1211_v20 = vpop.eup %1210  ;;  %v1602_v21 = vadd.f32 1.0, %v1209_v17  ;;  %v1631_v49 = vmul.f32 -1.442695, %v294_v35 }
  0xdb   : > { %v1213_v24 = vpop.eup %1212  ;;  %v488_v25 = vmul.f32 %v1211_v20, %v1584_v3  ;;  %1218 = vrcp.f32 %v1598_v19  ;;  %vm493_vm5 = vweird.f32 %v1211_v20  ;;  %v736_v37 = vand.u32 2147483647, %v1598_v19 }
  0xdc   : > { %v1215_v28 = vpop.eup %1214  ;;  %v608_v29 = vmul.f32 %v1213_v24, %v1586_v5  ;;  %1220 = vpow2.f32 %v1095_v15  ;;  %v738_v40 = vand.u32 2147483648, %v1598_v19  ;;  %vm613_vm6 = vweird.f32 %v1213_v24  ;;  %vm494_vm7 = vmor %vm492_vm0, %vm493_vm5 }
  0xdd   : > { %v1217_v32 = vpop.eup %1216  ;;  %v489_v33 = vsub.f32 1.0, %v488_v25  ;;  %1222 = vrcp.f32 %v1602_v21  ;;  %v1624_v41 = vadd.f32 1.0, %v1215_v28  ;;  %v856_v44 = vand.u32 2147483647, %v1602_v21  ;;  %v317_v53 = vpop.f32.mrf.mxu2  ;;  %vm614_vm10 = vmor %vm612_vm2, %vm613_vm6 }
  0xde   : > { %v609_v36 = vsub.f32 1.0, %v608_v29  ;;  %v1626_v42 = vadd.f32 1.0, %v1217_v32  ;;  %1224 = vpow2.f32 %v1103_v31  ;;  %v858_v47 = vand.u32 2147483648, %v1602_v21  ;;  %v341_v16 = vpop.f32.mrf.mxu3  ;;  %v272_v35 = vpop.f32.mrf.mxu0 }
  0xdf   : > { %v490_v39 = vmul.f32 %v1211_v20, %v489_v33  ;;  %1226 = vrcp.f32 %v1624_v41  ;;  %vm732_vm8 = vweird.f32 %v1598_v19  ;;  %vm852_vm9 = vweird.f32 %v1602_v21 }
  0xe0   : > { %v610_v43 = vmul.f32 %v1213_v24, %v609_v36  ;;  %vm1647_vm11 = vcmp.eq.f32.partialorder %v736_v37, 8.507059e+37  ;;  %v739_v57 = vor.u32 1.1754944e-38, %v738_v40  ;;  %1228 = vrcp.f32 %v1626_v42 }
  0xe1   : > { %v1219_v45 = vpop.eup %1218  ;;  %v491_v46 = vadd.f32 %v1211_v20, %v490_v39  ;;  %vm1655_vm12 = vcmp.eq.f32.partialorder %v856_v44, 8.507059e+37  ;;  %v859_v0 = vor.u32 1.1754944e-38, %v858_v47  ;;  %v511_v1 = vand.u32 2147483647, %v1624_v41 }
  0xe2   : > { %v1221_v50 = vpop.eup %1220  ;;  %v611_v51 = vadd.f32 %v1213_v24, %v610_v43  ;;  %v728_v52 = vmul.f32 %v1219_v45, %v1598_v19  ;;  %v318_v2 = vadd.f32 %v317_v53, %v1576_v48  ;;  %vm733_vm13 = vweird.f32 %v1219_v45  ;;  %v296_v53 = vpop.f32.mrf.mxu1 }
  0xe3   : > { %v1223_v54 = vpop.eup %1222  ;;  %v495_v55 = vsel %vm494_vm7, %v1211_v20, %v491_v46  ;;  %v1667_v6 = vadd.f32 1.0, %v1221_v50  ;;  %vm507_vm15 = vweird.f32 %v1624_v41  ;;  %v513_v8 = vand.u32 2147483648, %v1624_v41  ;;  %vm734_vm0 = vmor %vm732_vm8, %vm733_vm13 }
  0xe4   : > { %v500_v58 = vsel %vm1609_vm3, %v499_v27, %v495_v55  ;;  %v615_v59 = vsel %vm614_vm10, %v1213_v24, %v611_v51  ;;  %v729_v60 = vsub.f32 1.0, %v728_v52  ;;  %v848_v61 = vmul.f32 %v1223_v54, %v1602_v21  ;;  %v1225_v3 = vpop.eup %1224 }
  0xe5   : > { %968 = vst.msk [vmem:[%s1636_s12] sm:$0xff] %vm967_vm1, %v500_v58  ;;  %v620_v63 = vsel %vm1615_vm4, %v619_v34, %v615_v59  ;;  %v1227_v7 = vpop.eup %1226  ;;  %vm853_vm14 = vweird.f32 %v1223_v54  ;;  %1230 = vpow2.f32 %v1080_v38  ;;  %v1672_v12 = vadd.f32 1.0, %v1225_v3 }
  0xe6   : > { %976 = vst.msk [vmem:[%s1636_s12 + $0x40] sm:$0xff] %vm967_vm1, %v620_v63  ;;  %v730_v4 = vmul.f32 %v1219_v45, %v729_v60  ;;  %v849_v5 = vsub.f32 1.0, %v848_v61  ;;  %v503_v11 = vmul.f32 %v1227_v7, %v1624_v41  ;;  %v1229_v13 = vpop.eup %1228  ;;  %vm1676_vm2 = vcmp.eq.f32.partialorder %v511_v1, 8.507059e+37  ;;  %vm854_vm4 = vmor %vm852_vm9, %vm853_vm14 }
  0xe7   : > { %vm627_vm3 = vweird.f32 %v1626_v42  ;;  %v631_v15 = vand.u32 2147483647, %v1626_v42  ;;  %1232 = vrcp.f32 %v1667_v6  ;;  %v623_v22 = vmul.f32 %v1229_v13, %v1626_v42 }
  0xe8   : > { %v731_v9 = vadd.f32 %v1219_v45, %v730_v4  ;;  %v850_v10 = vmul.f32 %v1223_v54, %v849_v5  ;;  %v504_v20 = vsub.f32 1.0, %v503_v11  ;;  %vm508_vm5 = vweird.f32 %v1227_v7 }
  0xe9   : > { %v633_v23 = vand.u32 2147483648, %v1626_v42  ;;  %v751_v24 = vand.u32 2147483647, %v1667_v6  ;;  %v624_v27 = vsub.f32 1.0, %v623_v22  ;;  %1234 = vrcp.f32 %v1672_v12  ;;  %vm509_vm8 = vmor %vm507_vm15, %vm508_vm5 }
  0xea   : > { %v735_v17 = vsel %vm734_vm0, %v1219_v45, %v731_v9  ;;  %v851_v18 = vadd.f32 %v1223_v54, %v850_v10  ;;  %v505_v26 = vmul.f32 %v1227_v7, %v504_v20  ;;  %v514_v30 = vor.u32 1.1754944e-38, %v513_v8 }
  0xeb   : > { %v740_v19 = vsel %vm1647_vm11, %v739_v57, %v735_v17  ;;  %v1231_v28 = vpop.eup %1230  ;;  %vm1696_vm6 = vcmp.eq.f32.partialorder %v631_v15, 8.507059e+37  ;;  %v753_v31 = vand.u32 2147483648, %v1667_v6  ;;  %v625_v33 = vmul.f32 %v1229_v13, %v624_v27  ;;  %v344_v57 = vpop.f32.mrf.mxu3 }
  0xec   : > { %984 = vst.msk [vmem:[%s1636_s12 + $0x80] sm:$0xff] %vm967_vm1, %v740_v19  ;;  %v855_v25 = vsel %vm854_vm4, %v1223_v54, %v851_v18  ;;  %v506_v32 = vadd.f32 %v1227_v7, %v505_v26  ;;  %vm628_vm7 = vweird.f32 %v1229_v13  ;;  %v1703_v34 = vadd.f32 1.0, %v1231_v28  ;;  %v320_v54 = vpop.f32.mrf.mxu2 }
  0xed   : > { %v860_v29 = vsel %vm1655_vm12, %v859_v0, %v855_v25  ;;  %v1233_v36 = vpop.eup %1232  ;;  %v634_v37 = vor.u32 1.1754944e-38, %v633_v23  ;;  %vm747_vm9 = vweird.f32 %v1667_v6  ;;  %1236 = vpow2.f32 %v1631_v49  ;;  %vm629_vm11 = vmor %vm627_vm3, %vm628_vm7 }
  0xee   : > { %992 = vst.msk [vmem:[%s1636_s12 + $0xc0] sm:$0xff] %vm967_vm1, %v860_v29  ;;  %v1096_v38 = vmul.f32 -1.442695, %v318_v2  ;;  %v510_v39 = vsel %vm509_vm8, %v1227_v7, %v506_v32  ;;  %v626_v40 = vadd.f32 %v1229_v13, %v625_v33  ;;  %v743_v43 = vmul.f32 %v1233_v36, %v1667_v6  ;;  %v275_v33 = vpop.f32.mrf.mxu0 }
  0xef   : > { %vm1711_vm10 = vcmp.eq.f32.partialorder %v751_v24, 8.507059e+37  ;;  %v342_v45 = vadd.f32 %v341_v16, %v1576_v48  ;;  %v515_v41 = vsel %vm1676_vm2, %v514_v30, %v510_v39  ;;  %v754_v46 = vor.u32 1.1754944e-38, %v753_v31  ;;  %v1235_v49 = vpop.eup %1234 }
  0xf0   : > { %1238 = vrcp.f32 %v1703_v34  ;;  %v273_v47 = vadd.f32 %v272_v35, %v1576_v48  ;;  %969 = vst.msk [vmem:[%s1636_s12 + $0x8] sm:$0xff] %vm967_vm1, %v515_v41  ;;  %v630_v50 = vsel %vm629_vm11, %v1229_v13, %v626_v40  ;;  %v744_v51 = vsub.f32 1.0, %v743_v43 }
  0xf1   : > { %vm867_vm12 = vweird.f32 %v1672_v12  ;;  %v871_v52 = vand.u32 2147483647, %v1672_v12  ;;  %v635_v42 = vsel %vm1696_vm6, %v634_v37, %v630_v50  ;;  %v863_v55 = vmul.f32 %v1235_v49, %v1672_v12 }
  0xf2   : > { %v873_v56 = vand.u32 2147483648, %v1672_v12  ;;  %1240 = vpow2.f32 %v1096_v38  ;;  %977 = vst.msk [vmem:[%s1636_s12 + $0x48] sm:$0xff] %vm967_vm1, %v635_v42  ;;  %v745_v58 = vmul.f32 %v1233_v36, %v744_v51  ;;  %vm748_vm13 = vweird.f32 %v1233_v36 }
  0xf3   : > { %vm868_vm14 = vweird.f32 %v1235_v49  ;;  %v1104_v59 = vmul.f32 -1.442695, %v342_v45  ;;  %v1237_v60 = vpop.eup %1236  ;;  %v864_v61 = vsub.f32 1.0, %v863_v55  ;;  %v1081_v62 = vmul.f32 -1.442695, %v273_v47  ;;  %vm749_vm15 = vmor %vm747_vm9, %vm748_vm13 }
  0xf4   : > { %v297_v63 = vadd.f32 %v296_v53, %v1576_v48  ;;  %v321_v0 = vadd.f32 %v320_v54, %v1576_v48  ;;  %v746_v1 = vadd.f32 %v1233_v36, %v745_v58  ;;  %v1735_v2 = vadd.f32 1.0, %v1237_v60  ;;  %vm869_vm3 = vmor %vm867_vm12, %vm868_vm14 }
  0xf5   : > { %1242 = vpow2.f32 %v1104_v59  ;;  %v345_v3 = vadd.f32 %v344_v57, %v1576_v48  ;;  %v865_v5 = vmul.f32 %v1235_v49, %v864_v61  ;;  %vm1740_vm0 = vcmp.eq.f32.partialorder %v871_v52, 8.507059e+37 }
  0xf6   : > { %v1239_v4 = vpop.eup %1238  ;;  %1244 = vpow2.f32 %v1081_v62  ;;  %v1089_v7 = vmul.f32 -1.442695, %v297_v63  ;;  %v1097_v8 = vmul.f32 -1.442695, %v321_v0  ;;  %v750_v9 = vsel %vm749_vm15, %v1233_v36, %v746_v1 }
  0xf7   : > { %v518_v11 = vmul.f32 %v1239_v4, %v1703_v34  ;;  %1246 = vrcp.f32 %v1735_v2  ;;  %v755_v14 = vsel %vm1711_vm10, %v754_v46, %v750_v9  ;;  %v866_v15 = vadd.f32 %v1235_v49, %v865_v5 }
  0xf8   : > { %v1241_v13 = vpop.eup %1240  ;;  %v874_v6 = vor.u32 1.1754944e-38, %v873_v56  ;;  %vm522_vm2 = vweird.f32 %v1703_v34  ;;  %985 = vst.msk [vmem:[%s1636_s12 + $0x88] sm:$0xff] %vm967_vm1, %v755_v14  ;;  %v526_v17 = vand.u32 2147483647, %v1703_v34  ;;  %1248 = vpow2.f32 %v1089_v7 }
  0xf9   : > { %v519_v16 = vsub.f32 1.0, %v518_v11  ;;  %v1755_v18 = vadd.f32 1.0, %v1241_v13  ;;  %v870_v20 = vsel %vm869_vm3, %v1235_v49, %v866_v15  ;;  %v528_v22 = vand.u32 2147483648, %v1703_v34 }
  0xfa   : > { %1250 = vpow2.f32 %v1097_v8  ;;  %v1105_v19 = vmul.f32 -1.442695, %v345_v3  ;;  %v875_v24 = vsel %vm1740_vm0, %v874_v6, %v870_v20  ;;  %vm523_vm4 = vweird.f32 %v1239_v4 }
  0xfb   : > { %v1243_v23 = vpop.eup %1242  ;;  %v520_v25 = vmul.f32 %v1239_v4, %v519_v16  ;;  %1252 = vrcp.f32 %v1755_v18  ;;  %993 = vst.msk [vmem:[%s1636_s12 + $0xc8] sm:$0xff] %vm967_vm1, %v875_v24  ;;  %v646_v26 = vand.u32 2147483647, %v1735_v2  ;;  %v648_v30 = vand.u32 2147483648, %v1735_v2  ;;  %vm524_vm5 = vmor %vm522_vm2, %vm523_vm4 }
  0xfc   : > { %v1245_v12 = vpop.eup %1244  ;;  %v1764_v27 = vadd.f32 1.0, %v1243_v23  ;;  %1254 = vpow2.f32 %v1105_v19  ;;  %vm527_vm6 = vcmp.eq.f32.partialorder %v526_v17, 8.507059e+37  ;;  %v529_v31 = vor.u32 1.1754944e-38, %v528_v22  ;;  %v323_v17 = vpop.f32.mrf.mxu2 }
  0xfd   : > { %v1247_v28 = vpop.eup %1246  ;;  %v521_v29 = vadd.f32 %v1239_v4, %v520_v25  ;;  %v1767_v21 = vadd.f32 1.0, %v1245_v12  ;;  %v766_v37 = vand.u32 2147483647, %v1755_v18  ;;  %v768_v38 = vand.u32 2147483648, %v1755_v18 }
  0xfe   : > { %v638_v32 = vmul.f32 %v1247_v28, %v1735_v2  ;;  %v1249_v35 = vpop.eup %1248  ;;  %1256 = vrcp.f32 %v1764_v27  ;;  %vm642_vm7 = vweird.f32 %v1735_v2  ;;  %vm1779_vm8 = vcmp.eq.f32.partialorder %v646_v26, 8.507059e+37  ;;  %v299_v2 = vpop.f32.mrf.mxu1 }
  0xff   : > { %v525_v36 = vsel %vm524_vm5, %v1239_v4, %v521_v29  ;;  %1258 = vrcp.f32 %v1767_v21  ;;  %v649_v45 = vor.u32 1.1754944e-38, %v648_v30  ;;  %vm762_vm9 = vweird.f32 %v1755_v18 }
 0x100   : > { %v1251_v39 = vpop.eup %1250  ;;  %v530_v40 = vsel %vm527_vm6, %v529_v31, %v525_v36  ;;  %v639_v43 = vsub.f32 1.0, %v638_v32  ;;  %v276_v41 = vadd.f32 %v275_v33, %v1576_v48  ;;  %vm643_vm10 = vweird.f32 %v1247_v28 }
 0x101   : > { %v1253_v34 = vpop.eup %1252  ;;  %970 = vst.msk [vmem:[%s1636_s12 + $0x10] sm:$0xff] %vm967_vm1, %v530_v40  ;;  %v886_v49 = vand.u32 2147483647, %v1764_v27  ;;  %vm1787_vm11 = vcmp.eq.f32.partialorder %v766_v37, 8.507059e+37  ;;  %v769_v52 = vor.u32 1.1754944e-38, %v768_v38  ;;  %v888_v53 = vand.u32 2147483648, %v1764_v27  ;;  %vm644_vm14 = vmor %vm642_vm7, %vm643_vm10  ;;  %v347_v38 = vpop.f32.mrf.mxu3 }
 0x102   : > { %v640_v46 = vmul.f32 %v1247_v28, %v639_v43  ;;  %v758_v47 = vmul.f32 %v1253_v34, %v1755_v18  ;;  %v1255_v50 = vpop.eup %1254  ;;  %v1792_v54 = vadd.f32 1.0, %v1249_v35  ;;  %vm882_vm12 = vweird.f32 %v1764_v27 }
 0x103   : > { %vm537_vm13 = vweird.f32 %v1767_v21  ;;  %v1796_v56 = vadd.f32 1.0, %v1251_v39  ;;  %vm763_vm15 = vweird.f32 %v1253_v34  ;;  %v541_v58 = vand.u32 2147483647, %v1767_v21  ;;  %v278_v39 = vpop.f32.mrf.mxu0 }
 0x104   : > { %v641_v42 = vadd.f32 %v1247_v28, %v640_v46  ;;  %v759_v55 = vsub.f32 1.0, %v758_v47  ;;  %v1257_v57 = vpop.eup %1256  ;;  %v543_v59 = vand.u32 2147483648, %v1767_v21  ;;  %1260 = vrcp.f32 %v1792_v54  ;;  %vm764_vm2 = vmor %vm762_vm9, %vm763_vm15 }
 0x105   : > { %v1259_v60 = vpop.eup %1258  ;;  %v878_v63 = vmul.f32 %v1257_v57, %v1764_v27  ;;  %vm1804_vm0 = vcmp.eq.f32.partialorder %v886_v49, 8.507059e+37  ;;  %v1808_v1 = vadd.f32 1.0, %v1255_v50  ;;  %v889_v4 = vor.u32 1.1754944e-38, %v888_v53 }
 0x106   : > { %v645_v61 = vsel %vm644_vm14, %v1247_v28, %v641_v42  ;;  %v760_v62 = vmul.f32 %v1253_v34, %v759_v55  ;;  %v533_v5 = vmul.f32 %v1259_v60, %v1767_v21  ;;  %v661_v7 = vand.u32 2147483647, %v1792_v54 }
 0x107   : > { %v650_v3 = vsel %vm1779_vm8, %v649_v45, %v645_v61  ;;  %v879_v9 = vsub.f32 1.0, %v878_v63  ;;  %v663_v10 = vand.u32 2147483648, %v1792_v54  ;;  %1262 = vrcp.f32 %v1796_v56  ;;  %v302_v45 = vpop.f32.mrf.mxu1  ;;  %v326_v61 = vpop.f32.mrf.mxu2 }
 0x108   : > { %978 = vst.msk [vmem:[%s1636_s12 + $0x50] sm:$0xff] %vm967_vm1, %v650_v3  ;;  %v761_v8 = vadd.f32 %v1253_v34, %v760_v62  ;;  %v534_v11 = vsub.f32 1.0, %v533_v5  ;;  %vm1821_vm3 = vcmp.eq.f32.partialorder %v541_v58, 8.507059e+37  ;;  %v544_v14 = vor.u32 1.1754944e-38, %v543_v59 }
 0x109   : > { %v1082_v15 = vmul.f32 -1.442695, %v276_v41  ;;  %v880_v16 = vmul.f32 %v1257_v57, %v879_v9  ;;  %vm883_vm4 = vweird.f32 %v1257_v57  ;;  %1264 = vrcp.f32 %v1808_v1 }
 0x10a   : > { %v765_v6 = vsel %vm764_vm2, %v1253_v34, %v761_v8  ;;  %v1261_v20 = vpop.eup %1260  ;;  %v535_v18 = vmul.f32 %v1259_v60, %v534_v11  ;;  %vm538_vm5 = vweird.f32 %v1259_v60  ;;  %vm657_vm6 = vweird.f32 %v1792_v54  ;;  %vm884_vm8 = vmor %vm882_vm12, %vm883_vm4 }
 0x10b   : > { %v770_v22 = vsel %vm1787_vm11, %v769_v52, %v765_v6  ;;  %v881_v19 = vadd.f32 %v1257_v57, %v880_v16  ;;  %v653_v23 = vmul.f32 %v1261_v20, %v1792_v54  ;;  %vm1832_vm7 = vcmp.eq.f32.partialorder %v661_v7, 8.507059e+37  ;;  %vm539_vm10 = vmor %vm537_vm13, %vm538_vm5 }
 0x10c   : > { %986 = vst.msk [vmem:[%s1636_s12 + $0x90] sm:$0xff] %vm967_vm1, %v770_v22  ;;  %v664_v25 = vor.u32 1.1754944e-38, %v663_v10  ;;  %v781_v12 = vand.u32 2147483647, %v1796_v56  ;;  %v536_v26 = vadd.f32 %v1259_v60, %v535_v18  ;;  %vm777_vm9 = vweird.f32 %v1796_v56 }
 0x10d   : > { %v783_v28 = vand.u32 2147483648, %v1796_v56  ;;  %1266 = vpow2.f32 %v1082_v15  ;;  %v300_v29 = vadd.f32 %v299_v2, %v1576_v48  ;;  %v1263_v30 = vpop.eup %1262  ;;  %v885_v31 = vsel %vm884_vm8, %v1257_v57, %v881_v19 }
 0x10e   : > { %v654_v32 = vsub.f32 1.0, %v653_v23  ;;  %vm658_vm11 = vweird.f32 %v1261_v20  ;;  %v324_v27 = vadd.f32 %v323_v17, %v1576_v48  ;;  %v890_v33 = vsel %vm1804_vm0, %v889_v4, %v885_v31 }
 0x10f   : > { %v540_v35 = vsel %vm539_vm10, %v1259_v60, %v536_v26  ;;  %v773_v36 = vmul.f32 %v1263_v30, %v1796_v56  ;;  %vm897_vm12 = vweird.f32 %v1808_v1  ;;  %v901_v37 = vand.u32 2147483647, %v1808_v1  ;;  %v1265_v40 = vpop.eup %1264  ;;  %994 = vst.msk [vmem:[%s1636_s12 + $0xd0] sm:$0xff] %vm967_vm1, %v890_v33  ;;  %vm659_vm14 = vmor %vm657_vm6, %vm658_vm11 }
 0x110   : > { %v545_v21 = vsel %vm1821_vm3, %v544_v14, %v540_v35  ;;  %v655_v43 = vmul.f32 %v1261_v20, %v654_v32  ;;  %v903_v34 = vand.u32 2147483648, %v1808_v1  ;;  %v1090_v44 = vmul.f32 -1.442695, %v300_v29  ;;  %v350_v14 = vpop.f32.mrf.mxu3 }
 0x111   : > { %971 = vst.msk [vmem:[%s1636_s12 + $0x18] sm:$0xff] %vm967_vm1, %v545_v21  ;;  %v774_v41 = vsub.f32 1.0, %v773_v36  ;;  %vm778_vm13 = vweird.f32 %v1263_v30  ;;  %v893_v46 = vmul.f32 %v1265_v40, %v1808_v1  ;;  %v1098_v47 = vmul.f32 -1.442695, %v324_v27  ;;  %v281_v1 = vpop.f32.mrf.mxu0 }
 0x112   : > { %v656_v49 = vadd.f32 %v1261_v20, %v655_v43  ;;  %1268 = vpow2.f32 %v1090_v44  ;;  %v348_v50 = vadd.f32 %v347_v38, %v1576_v48  ;;  %v279_v51 = vadd.f32 %v278_v39, %v1576_v48  ;;  %vm779_vm0 = vmor %vm777_vm9, %vm778_vm13 }
 0x113   : > { %v1267_v52 = vpop.eup %1266  ;;  %v775_v53 = vmul.f32 %v1263_v30, %v774_v41  ;;  %v894_v42 = vsub.f32 1.0, %v893_v46  ;;  %1270 = vpow2.f32 %v1098_v47  ;;  %v303_v55 = vadd.f32 %v302_v45, %v1576_v48 }
 0x114   : > { %v660_v57 = vsel %vm659_vm14, %v1261_v20, %v656_v49  ;;  %v1865_v58 = vadd.f32 1.0, %v1267_v52  ;;  %v1106_v59 = vmul.f32 -1.442695, %v348_v50  ;;  %v1083_v60 = vmul.f32 -1.442695, %v279_v51 }
 0x115   : > { %v665_v62 = vsel %vm1832_vm7, %v664_v25, %v660_v57  ;;  %v776_v63 = vadd.f32 %v1263_v30, %v775_v53  ;;  %v895_v0 = vmul.f32 %v1265_v40, %v894_v42  ;;  %vm898_vm15 = vweird.f32 %v1265_v40 }
 0x116   : > { %979 = vst.msk [vmem:[%s1636_s12 + $0x58] sm:$0xff] %vm967_vm1, %v665_v62  ;;  %vm782_vm2 = vcmp.eq.f32.partialorder %v781_v12, 8.507059e+37  ;;  %v784_v54 = vor.u32 1.1754944e-38, %v783_v28  ;;  %1272 = vrcp.f32 %v1865_v58  ;;  %v1091_v2 = vmul.f32 -1.442695, %v303_v55  ;;  %vm899_vm3 = vmor %vm897_vm12, %vm898_vm15 }
 0x117   : > { %v780_v3 = vsel %vm779_vm0, %v1263_v30, %v776_v63  ;;  %v896_v4 = vadd.f32 %v1265_v40, %v895_v0  ;;  %1274 = vpow2.f32 %v1106_v59  ;;  %v327_v5 = vadd.f32 %v326_v61, %v1576_v48 }
 0x118   : > { %v1269_v7 = vpop.eup %1268  ;;  %v785_v8 = vsel %vm782_vm2, %v784_v54, %v780_v3  ;;  %v904_v9 = vor.u32 1.1754944e-38, %v903_v34  ;;  %1276 = vpow2.f32 %v1083_v60  ;;  %vm902_vm4 = vcmp.eq.f32.partialorder %v901_v37, 8.507059e+37 }
 0x119   : > { %v1271_v56 = vpop.eup %1270  ;;  %987 = vst.msk [vmem:[%s1636_s12 + $0x98] sm:$0xff] %vm967_vm1, %v785_v8  ;;  %v900_v10 = vsel %vm899_vm3, %v1265_v40, %v896_v4  ;;  %v556_v11 = vand.u32 2147483647, %v1865_v58  ;;  %v1881_v13 = vadd.f32 1.0, %v1269_v7  ;;  %1278 = vpow2.f32 %v1091_v2 }
 0x11a   : > { %v905_v15 = vsel %vm902_vm4, %v904_v9, %v900_v10  ;;  %v1883_v6 = vadd.f32 1.0, %v1271_v56  ;;  %v1099_v16 = vmul.f32 -1.442695, %v327_v5  ;;  %v558_v20 = vand.u32 2147483648, %v1865_v58  ;;  %v305_v56 = vpop.f32.mrf.mxu1  ;;  %v329_v10 = vpop.f32.mrf.mxu2 }
 0x11b   : > { %995 = vst.msk [vmem:[%s1636_s12 + $0xd8] sm:$0xff] %vm967_vm1, %v905_v15  ;;  %1280 = vrcp.f32 %v1881_v13  ;;  %v351_v22 = vadd.f32 %v350_v14, %v1576_v48  ;;  %vm552_vm5 = vweird.f32 %v1865_v58  ;;  %vm1893_vm6 = vcmp.eq.f32.partialorder %v556_v11, 8.507059e+37 }
 0x11c   : > { %v1273_v17 = vpop.eup %1272  ;;  %1282 = vrcp.f32 %v1883_v6  ;;  %v282_v24 = vadd.f32 %v281_v1, %v1576_v48  ;;  %v676_v12 = vand.u32 2147483647, %v1881_v13  ;;  %v678_v26 = vand.u32 2147483648, %v1881_v13 }
 0x11d   : > { %v1275_v18 = vpop.eup %1274  ;;  %v548_v19 = vmul.f32 %v1273_v17, %v1865_v58  ;;  %1284 = vpow2.f32 %v1099_v16  ;;  %v796_v30 = vand.u32 2147483647, %v1883_v6  ;;  %v798_v31 = vand.u32 2147483648, %v1883_v6 }
 0x11e   : > { %v1277_v25 = vpop.eup %1276  ;;  %v1900_v28 = vadd.f32 1.0, %v1275_v18  ;;  %v559_v33 = vor.u32 1.1754944e-38, %v558_v20  ;;  %vm672_vm7 = vweird.f32 %v1881_v13  ;;  %v1107_v35 = vmul.f32 -1.442695, %v351_v22 }
 0x11f   : > { %v549_v29 = vsub.f32 1.0, %v548_v19  ;;  %v1904_v32 = vadd.f32 1.0, %v1277_v25  ;;  %v1279_v27 = vpop.eup %1278  ;;  %vm553_vm8 = vweird.f32 %v1273_v17  ;;  %v1084_v38 = vmul.f32 -1.442695, %v282_v24 }
 0x120   : > { %1286 = vrcp.f32 %v1900_v28  ;;  %vm1910_vm9 = vcmp.eq.f32.partialorder %v676_v12, 8.507059e+37  ;;  %v679_v43 = vor.u32 1.1754944e-38, %v678_v26  ;;  %vm792_vm10 = vweird.f32 %v1883_v6  ;;  %vm554_vm12 = vmor %vm552_vm5, %vm553_vm8 }
 0x121   : > { %v1281_v36 = vpop.eup %1280  ;;  %v550_v37 = vmul.f32 %v1273_v17, %v549_v29  ;;  %1288 = vrcp.f32 %v1904_v32  ;;  %vm1916_vm11 = vcmp.eq.f32.partialorder %v796_v30, 8.507059e+37  ;;  %v799_v41 = vor.u32 1.1754944e-38, %v798_v31 }
 0x122   : > { %v1283_v39 = vpop.eup %1282  ;;  %v668_v40 = vmul.f32 %v1281_v36, %v1881_v13  ;;  %v916_v46 = vand.u32 2147483647, %v1900_v28  ;;  %v918_v50 = vand.u32 2147483648, %v1900_v28  ;;  %v1924_v51 = vadd.f32 1.0, %v1279_v27 }
 0x123   : > { %v551_v34 = vadd.f32 %v1273_v17, %v550_v37  ;;  %v788_v44 = vmul.f32 %v1283_v39, %v1883_v6  ;;  %v1285_v47 = vpop.eup %1284  ;;  %1290 = vpow2.f32 %v1107_v35  ;;  %vm673_vm13 = vweird.f32 %v1281_v36  ;;  %v353_v35 = vpop.f32.mrf.mxu3 }
 0x124   : > { %v669_v49 = vsub.f32 1.0, %v668_v40  ;;  %v1926_v42 = vadd.f32 1.0, %v1285_v47  ;;  %1292 = vpow2.f32 %v1084_v38  ;;  %vm793_vm14 = vweird.f32 %v1283_v39  ;;  %vm674_vm2 = vmor %vm672_vm7, %vm673_vm13  ;;  %v332_v47 = vpop.f32.mrf.mxu2 }
 0x125   : > { %v555_v52 = vsel %vm554_vm12, %v1273_v17, %v551_v34  ;;  %v789_v53 = vsub.f32 1.0, %v788_v44  ;;  %1294 = vrcp.f32 %v1924_v51  ;;  %vm912_vm15 = vweird.f32 %v1900_v28  ;;  %vm794_vm3 = vmor %vm792_vm10, %vm793_vm14 }
 0x126   : > { %v1287_v55 = vpop.eup %1286  ;;  %v560_v57 = vsel %vm1893_vm6, %v559_v33, %v555_v52  ;;  %v670_v59 = vmul.f32 %v1281_v36, %v669_v49  ;;  %vm567_vm0 = vweird.f32 %v1904_v32  ;;  %v573_v0 = vand.u32 2147483648, %v1904_v32 }
 0x127   : > { %v1289_v58 = vpop.eup %1288  ;;  %972 = vst.msk [vmem:[%s1636_s12 + $0x20] sm:$0xff] %vm967_vm1, %v560_v57  ;;  %v790_v60 = vmul.f32 %v1283_v39, %v789_v53  ;;  %v908_v61 = vmul.f32 %v1287_v55, %v1900_v28  ;;  %v571_v3 = vand.u32 2147483647, %v1904_v32  ;;  %1296 = vrcp.f32 %v1926_v42 }
 0x128   : > { %v671_v62 = vadd.f32 %v1281_v36, %v670_v59  ;;  %v563_v63 = vmul.f32 %v1289_v58, %v1904_v32  ;;  %vm1944_vm4 = vcmp.eq.f32.partialorder %v916_v46, 8.507059e+37  ;;  %v919_v8 = vor.u32 1.1754944e-38, %v918_v50  ;;  %v308_v46 = vpop.f32.mrf.mxu1 }
 0x129   : > { %v791_v54 = vadd.f32 %v1283_v39, %v790_v60  ;;  %v909_v2 = vsub.f32 1.0, %v908_v61  ;;  %v1291_v4 = vpop.eup %1290  ;;  %vm913_vm5 = vweird.f32 %v1287_v55  ;;  %vm568_vm6 = vweird.f32 %v1289_v58 }
 0x12a   : > { %v675_v5 = vsel %vm674_vm2, %v1281_v36, %v671_v62  ;;  %v564_v9 = vsub.f32 1.0, %v563_v63  ;;  %v1293_v11 = vpop.eup %1292  ;;  %v574_v17 = vor.u32 1.1754944e-38, %v573_v0  ;;  %v691_v18 = vand.u32 2147483647, %v1924_v51  ;;  %vm914_vm7 = vmor %vm912_vm15, %vm913_vm5 }
 0x12b   : > { %v680_v13 = vsel %vm1910_vm9, %v679_v43, %v675_v5  ;;  %v795_v14 = vsel %vm794_vm3, %v1283_v39, %v791_v54  ;;  %v910_v15 = vmul.f32 %v1287_v55, %v909_v2  ;;  %v1295_v16 = vpop.eup %1294  ;;  %v1958_v19 = vadd.f32 1.0, %v1291_v4  ;;  %vm569_vm8 = vmor %vm567_vm0, %vm568_vm6  ;;  %v284_v39 = vpop.f32.mrf.mxu0 }
 0x12c   : > { %980 = vst.msk [vmem:[%s1636_s12 + $0x60] sm:$0xff] %vm967_vm1, %v680_v13  ;;  %v800_v6 = vsel %vm1916_vm11, %v799_v41, %v795_v14  ;;  %v565_v1 = vmul.f32 %v1289_v58, %v564_v9  ;;  %v683_v22 = vmul.f32 %v1295_v16, %v1924_v51  ;;  %v693_v24 = vand.u32 2147483648, %v1924_v51 }
 0x12d   : > { %988 = vst.msk [vmem:[%s1636_s12 + $0xa0] sm:$0xff] %vm967_vm1, %v800_v6  ;;  %v911_v20 = vadd.f32 %v1287_v55, %v910_v15  ;;  %v811_v25 = vand.u32 2147483647, %v1926_v42  ;;  %v1964_v12 = vadd.f32 1.0, %v1293_v11  ;;  %v1297_v26 = vpop.eup %1296  ;;  %v813_v31 = vand.u32 2147483648, %v1926_v42 }
 0x12e   : > { %v566_v23 = vadd.f32 %v1289_v58, %v565_v1  ;;  %v684_v30 = vsub.f32 1.0, %v683_v22  ;;  %1298 = vrcp.f32 %v1958_v19  ;;  %vm572_vm9 = vcmp.eq.f32.partialorder %v571_v3, 8.507059e+37 }
 0x12f   : > { %v915_v29 = vsel %vm914_vm7, %v1287_v55, %v911_v20  ;;  %v803_v33 = vmul.f32 %v1297_v26, %v1926_v42  ;;  %vm687_vm10 = vweird.f32 %v1924_v51  ;;  %vm688_vm11 = vweird.f32 %v1295_v16 }
 0x130   : > { %v920_v28 = vsel %vm1944_vm4, %v919_v8, %v915_v29  ;;  %v570_v27 = vsel %vm569_vm8, %v1289_v58, %v566_v23  ;;  %v685_v37 = vmul.f32 %v1295_v16, %v684_v30  ;;  %vm1978_vm12 = vcmp.eq.f32.partialorder %v691_v18, 8.507059e+37  ;;  %vm689_vm15 = vmor %vm687_vm10, %vm688_vm11 }
 0x131   : > { %996 = vst.msk [vmem:[%s1636_s12 + $0xe0] sm:$0xff] %vm967_vm1, %v920_v28  ;;  %v575_v36 = vsel %vm572_vm9, %v574_v17, %v570_v27  ;;  %v804_v38 = vsub.f32 1.0, %v803_v33  ;;  %vm807_vm13 = vweird.f32 %v1926_v42  ;;  %1300 = vrcp.f32 %v1964_v12 }
 0x132   : > { %973 = vst.msk [vmem:[%s1636_s12 + $0x28] sm:$0xff] %vm967_vm1, %v575_v36  ;;  %v686_v40 = vadd.f32 %v1295_v16, %v685_v37  ;;  %v694_v21 = vor.u32 1.1754944e-38, %v693_v24  ;;  %vm1984_vm14 = vcmp.eq.f32.partialorder %v811_v25, 8.507059e+37  ;;  %v814_v34 = vor.u32 1.1754944e-38, %v813_v31 }
 0x133   : > { %v805_v44 = vmul.f32 %v1297_v26, %v804_v38  ;;  %vm808_vm0 = vweird.f32 %v1297_v26  ;;  %vm927_vm2 = vweird.f32 %v1958_v19  ;;  %v306_v45 = vadd.f32 %v305_v56, %v1576_v48  ;;  %v356_v56 = vpop.f32.mrf.mxu3 }
 0x134   : > { %v330_v41 = vadd.f32 %v329_v10, %v1576_v48  ;;  %v1299_v49 = vpop.eup %1298  ;;  %v690_v50 = vsel %vm689_vm15, %v1295_v16, %v686_v40  ;;  %v931_v51 = vand.u32 2147483647, %v1958_v19  ;;  %v354_v52 = vadd.f32 %v353_v35, %v1576_v48  ;;  %vm809_vm3 = vmor %vm807_vm13, %vm808_vm0 }
 0x135   : > { %v285_v53 = vadd.f32 %v284_v39, %v1576_v48  ;;  %v695_v55 = vsel %vm1978_vm12, %v694_v21, %v690_v50  ;;  %v806_v57 = vadd.f32 %v1297_v26, %v805_v44  ;;  %v923_v59 = vmul.f32 %v1299_v49, %v1958_v19 }
 0x136   : > { %v933_v58 = vand.u32 2147483648, %v1958_v19  ;;  %981 = vst.msk [vmem:[%s1636_s12 + $0x68] sm:$0xff] %vm967_vm1, %v695_v55  ;;  %v1092_v60 = vmul.f32 -1.442695, %v306_v45  ;;  %v1100_v61 = vmul.f32 -1.442695, %v330_v41  ;;  %v309_v62 = vadd.f32 %v308_v46, %v1576_v48 }
 0x137   : > { %v333_v63 = vadd.f32 %v332_v47, %v1576_v48  ;;  %v1301_v0 = vpop.eup %1300  ;;  %v810_v54 = vsel %vm809_vm3, %v1297_v26, %v806_v57  ;;  %v924_v2 = vsub.f32 1.0, %v923_v59  ;;  %v1108_v3 = vmul.f32 -1.442695, %v354_v52 }
 0x138   : > { %v1085_v4 = vmul.f32 -1.442695, %v285_v53  ;;  %v815_v5 = vsel %vm1984_vm14, %v814_v34, %v810_v54  ;;  %vm928_vm4 = vweird.f32 %v1299_v49  ;;  %v578_v7 = vmul.f32 %v1301_v0, %v1964_v12 }
 0x139   : > { %1302 = vpow2.f32 %v1092_v60  ;;  %989 = vst.msk [vmem:[%s1636_s12 + $0xa8] sm:$0xff] %vm967_vm1, %v815_v5  ;;  %v925_v42 = vmul.f32 %v1299_v49, %v924_v2  ;;  %v1093_v8 = vmul.f32 -1.442695, %v309_v62  ;;  %v1101_v9 = vmul.f32 -1.442695, %v333_v63  ;;  %vm929_vm6 = vmor %vm927_vm2, %vm928_vm4 }
 0x13a   : > { %1304 = vpow2.f32 %v1100_v61  ;;  %v579_v10 = vsub.f32 1.0, %v578_v7  ;;  %vm582_vm5 = vweird.f32 %v1964_v12  ;;  %v586_v11 = vand.u32 2147483647, %v1964_v12 }
 0x13b   : > { %1306 = vpow2.f32 %v1108_v3  ;;  %v926_v13 = vadd.f32 %v1299_v49, %v925_v42  ;;  %v934_v14 = vor.u32 1.1754944e-38, %v933_v58  ;;  %v588_v15 = vand.u32 2147483648, %v1964_v12 }
 0x13c   : > { %1308 = vpow2.f32 %v1085_v4  ;;  %v580_v16 = vmul.f32 %v1301_v0, %v579_v10  ;;  %vm583_vm7 = vweird.f32 %v1301_v0  ;;  %v357_v6 = vadd.f32 %v356_v56, %v1576_v48 }
 0x13d   : > { %1310 = vpow2.f32 %v1093_v8  ;;  %v930_v1 = vsel %vm929_vm6, %v1299_v49, %v926_v13  ;;  %vm932_vm8 = vcmp.eq.f32.partialorder %v931_v51, 8.507059e+37  ;;  %vm584_vm9 = vmor %vm582_vm5, %vm583_vm7  ;;  %v589_v19 = vor.u32 1.1754944e-38, %v588_v15 }
 0x13e   : > { %1312 = vpow2.f32 %v1101_v9  ;;  %v935_v20 = vsel %vm932_vm8, %v934_v14, %v930_v1  ;;  %v581_v22 = vadd.f32 %v1301_v0, %v580_v16  ;;  %vm587_vm10 = vcmp.eq.f32.partialorder %v586_v11, 8.507059e+37 }
 0x13f   : > { %v1303_v17 = vpop.eup %1302  ;;  %997 = vst.msk [vmem:[%s1636_s12 + $0xe8] sm:$0xff] %vm967_vm1, %v935_v20  ;;  %v1109_v26 = vmul.f32 -1.442695, %v357_v6 }
 0x140   : > { %v1305_v18 = vpop.eup %1304  ;;  %v2021_v23 = vadd.f32 1.0, %v1303_v17  ;;  %v585_v25 = vsel %vm584_vm9, %v1301_v0, %v581_v22 }
 0x141   : > { %v1307_v24 = vpop.eup %1306  ;;  %v2023_v48 = vadd.f32 1.0, %v1305_v18  ;;  %v590_v30 = vsel %vm587_vm10, %v589_v19, %v585_v25 }
 0x142   : > { %v1309_v29 = vpop.eup %1308  ;;  %1314 = vrcp.f32 %v2021_v23  ;;  %974 = vst.msk [vmem:[%s1636_s12 + $0x30] sm:$0xff] %vm967_vm1, %v590_v30  ;;  %v2029_v28 = vadd.f32 1.0, %v1307_v24  ;;  %v706_v33 = vand.u32 2147483647, %v2021_v23  ;;  %v708_v35 = vand.u32 2147483648, %v2021_v23 }
 0x143   : > { %v1311_v31 = vpop.eup %1310  ;;  %1316 = vrcp.f32 %v2023_v48  ;;  %v2031_v27 = vadd.f32 1.0, %v1309_v29  ;;  %v826_v37 = vand.u32 2147483647, %v2023_v48  ;;  %v828_v32 = vand.u32 2147483648, %v2023_v48 }
 0x144   : > { %v1313_v12 = vpop.eup %1312  ;;  %v2035_v36 = vadd.f32 1.0, %v1311_v31  ;;  %1318 = vpow2.f32 %v1109_v26  ;;  %vm702_vm11 = vweird.f32 %v2021_v23  ;;  %vm822_vm12 = vweird.f32 %v2023_v48 }
 0x145   : > { %1320 = vrcp.f32 %v2029_v28  ;;  %v2041_v38 = vadd.f32 1.0, %v1313_v12  ;;  %vm2047_vm13 = vcmp.eq.f32.partialorder %v706_v33, 8.507059e+37  ;;  %v709_v34 = vor.u32 1.1754944e-38, %v708_v35 }
 0x146   : > { %1322 = vrcp.f32 %v2031_v27  ;;  %v946_v44 = vand.u32 2147483647, %v2029_v28  ;;  %v948_v45 = vand.u32 2147483648, %v2029_v28  ;;  %vm2054_vm14 = vcmp.eq.f32.partialorder %v826_v37, 8.507059e+37 }
 0x147   : > { %1324 = vrcp.f32 %v2035_v36  ;;  %v601_v47 = vand.u32 2147483647, %v2031_v27  ;;  %v603_v49 = vand.u32 2147483648, %v2031_v27  ;;  %v829_v52 = vor.u32 1.1754944e-38, %v828_v32 }
 0x148   : > { %v1315_v39 = vpop.eup %1314  ;;  %vm942_vm15 = vweird.f32 %v2029_v28  ;;  %1326 = vrcp.f32 %v2041_v38  ;;  %vm597_vm2 = vweird.f32 %v2031_v27  ;;  %vm717_vm3 = vweird.f32 %v2035_v36 }
 0x149   : > { %v1317_v40 = vpop.eup %1316  ;;  %v698_v21 = vmul.f32 %v1315_v39, %v2021_v23  ;;  %vm703_vm0 = vweird.f32 %v1315_v39  ;;  %vm2065_vm5 = vcmp.eq.f32.partialorder %v946_v44, 8.507059e+37  ;;  %v949_v61 = vor.u32 1.1754944e-38, %v948_v45 }
 0x14a   : > { %v818_v41 = vmul.f32 %v1317_v40, %v2023_v48  ;;  %v1319_v50 = vpop.eup %1318  ;;  %vm823_vm4 = vweird.f32 %v1317_v40  ;;  %vm2070_vm6 = vcmp.eq.f32.partialorder %v601_v47, 8.507059e+37  ;;  %v604_v2 = vor.u32 1.1754944e-38, %v603_v49  ;;  %vm704_vm7 = vmor %vm702_vm11, %vm703_vm0 }
 0x14b   : > { %v699_v51 = vsub.f32 1.0, %v698_v21  ;;  %v1321_v53 = vpop.eup %1320  ;;  %v721_v3 = vand.u32 2147483647, %v2035_v36  ;;  %v723_v42 = vand.u32 2147483648, %v2035_v36  ;;  %v486_v56 = vadd.f32 1.0, %v1319_v50  ;;  %vm824_vm9 = vmor %vm822_vm12, %vm823_vm4 }
 0x14c   : > { %v819_v55 = vsub.f32 1.0, %v818_v41  ;;  %v1323_v57 = vpop.eup %1322  ;;  %v938_v58 = vmul.f32 %v1321_v53, %v2029_v28  ;;  %vm943_vm8 = vweird.f32 %v1321_v53  ;;  %v841_v23 = vand.u32 2147483647, %v2041_v38 }
 0x14d   : > { %v700_v59 = vmul.f32 %v1315_v39, %v699_v51  ;;  %v1325_v62 = vpop.eup %1324  ;;  %v593_v0 = vmul.f32 %v1323_v57, %v2031_v27  ;;  %vm598_vm10 = vweird.f32 %v1323_v57  ;;  %vm944_vm12 = vmor %vm942_vm15, %vm943_vm8  ;;  %1328 = vrcp.f32 %v486_v56 }
 0x14e   : > { %v820_v63 = vmul.f32 %v1317_v40, %v819_v55  ;;  %v939_v5 = vsub.f32 1.0, %v938_v58  ;;  %v713_v7 = vmul.f32 %v1325_v62, %v2035_v36  ;;  %v1327_v10 = vpop.eup %1326  ;;  %vm718_vm11 = vweird.f32 %v1325_v62 }
 0x14f   : > { %v701_v4 = vadd.f32 %v1315_v39, %v700_v59  ;;  %v594_v9 = vsub.f32 1.0, %v593_v0  ;;  %v833_v1 = vmul.f32 %v1327_v10, %v2041_v38  ;;  %v724_v48 = vor.u32 1.1754944e-38, %v723_v42 }
 0x150   : > { %v821_v8 = vadd.f32 %v1317_v40, %v820_v63  ;;  %v940_v13 = vmul.f32 %v1321_v53, %v939_v5  ;;  %v714_v14 = vsub.f32 1.0, %v713_v7  ;;  %v843_v26 = vand.u32 2147483648, %v2041_v38 }
 0x151   : > { %v705_v11 = vsel %vm704_vm7, %v1315_v39, %v701_v4  ;;  %v595_v6 = vmul.f32 %v1323_v57, %v594_v9  ;;  %v834_v19 = vsub.f32 1.0, %v833_v1  ;;  %vm838_vm15 = vweird.f32 %v1327_v10 }
 0x152   : > { %v710_v15 = vsel %vm2047_vm13, %v709_v34, %v705_v11  ;;  %v825_v16 = vsel %vm824_vm9, %v1317_v40, %v821_v8  ;;  %v941_v20 = vadd.f32 %v1321_v53, %v940_v13  ;;  %v715_v22 = vmul.f32 %v1325_v62, %v714_v14  ;;  %vm599_vm13 = vmor %vm597_vm2, %vm598_vm10 }
 0x153   : > { %982 = vst.msk [vmem:[%s1636_s12 + $0x70] sm:$0xff] %vm967_vm1, %v710_v15  ;;  %v830_v17 = vsel %vm2054_vm14, %v829_v52, %v825_v16  ;;  %v596_v18 = vadd.f32 %v1323_v57, %v595_v6  ;;  %vm719_vm14 = vmor %vm717_vm3, %vm718_vm11  ;;  %v835_v31 = vmul.f32 %v1327_v10, %v834_v19  ;;  %vm722_vm0 = vcmp.eq.f32.partialorder %v721_v3, 8.507059e+37  ;;  %v1329_v36 = vpop.eup %1328 }
 0x154   : > { %990 = vst.msk [vmem:[%s1636_s12 + $0xb0] sm:$0xff] %vm967_vm1, %v830_v17  ;;  %v945_v24 = vsel %vm944_vm12, %v1321_v53, %v941_v20  ;;  %v716_v25 = vadd.f32 %v1325_v62, %v715_v22  ;;  %vm837_vm2 = vweird.f32 %v2041_v38  ;;  %v844_v35 = vor.u32 1.1754944e-38, %v843_v26 }
 0x155   : > { %v950_v29 = vsel %vm2065_vm5, %v949_v61, %v945_v24  ;;  %v600_v30 = vsel %vm599_vm13, %v1323_v57, %v596_v18  ;;  %v836_v33 = vadd.f32 %v1327_v10, %v835_v31  ;;  %vm839_vm4 = vmor %vm837_vm2, %vm838_vm15  ;;  %vm842_vm3 = vcmp.eq.f32.partialorder %v841_v23, 8.507059e+37 }
 0x156   : > { %998 = vst.msk [vmem:[%s1636_s12 + $0xf0] sm:$0xff] %vm967_vm1, %v950_v29  ;;  %v605_v12 = vsel %vm2070_vm6, %v604_v2, %v600_v30  ;;  %v720_v28 = vsel %vm719_vm14, %v1325_v62, %v716_v25  ;;  %v953_v39 = vmul.f32 %v1329_v36, %v486_v56  ;;  %v963_v21 = vand.u32 2147483648, %v486_v56 }
 0x157   : > { %975 = vst.msk [vmem:[%s1636_s12 + $0x38] sm:$0xff] %vm967_vm1, %v605_v12  ;;  %v725_v27 = vsel %vm722_vm0, %v724_v48, %v720_v28  ;;  %v840_v37 = vsel %vm839_vm4, %v1327_v10, %v836_v33  ;;  %vm958_vm5 = vweird.f32 %v1329_v36  ;;  %v961_v34 = vand.u32 2147483647, %v486_v56 }
 0x158   : > { %983 = vst.msk [vmem:[%s1636_s12 + $0x78] sm:$0xff] %vm967_vm1, %v725_v27  ;;  %v845_v32 = vsel %vm842_vm3, %v844_v35, %v840_v37  ;;  %v954_v40 = vsub.f32 1.0, %v953_v39  ;;  %vm957_vm6 = vweird.f32 %v486_v56  ;;  %v964_v38 = vor.u32 1.1754944e-38, %v963_v21 }
 0x159   : > { %991 = vst.msk [vmem:[%s1636_s12 + $0xb8] sm:$0xff] %vm967_vm1, %v845_v32  ;;  %vm959_vm7 = vmor %vm957_vm6, %vm958_vm5  ;;  %vm962_vm8 = vcmp.eq.f32.partialorder %v961_v34, 8.507059e+37 }
 0x15a   : > { %v955_v43 = vmul.f32 %v1329_v36, %v954_v40 }
 0x15c   : > { %v956_v44 = vadd.f32 %v1329_v36, %v955_v43 }
 0x15e   : > { %v960_v45 = vsel %vm959_vm7, %v1329_v36, %v956_v44 }
 0x15f   : > { %v965_v41 = vsel %vm962_vm8, %v964_v38, %v960_v45 }
 0x160   : > { %999 = vst.msk [vmem:[%s1636_s12 + $0xf8] sm:$0xff] %vm967_vm1, %v965_v41 }
 0x161 PF: > { %p14_p7 = scmp.ge.s32.totalorder %s1441_s18, 6   ;;  %s2183_s14 = smov %s1386_s15 }
 0x162   : > { %s2184_s15 = smov %s1390_s16  ;;  %s2185_s16 = smov %s1451_s21 }
 0x163   : > { %s2186_s17 = smov %s1441_s18  ;;  %16 = sbr.rel (!%p14_p7) target bundleno = 5 (0x5), region = 72 }
 0x168   :  { %1022 = vsyncpa [#allocation4], 1 }
 0x169   :  { %1024 = vsyncpa [#allocation4 + $0x1], 1 }

</bundles_post_ra>
